<compile_context>
chip_gen: v6e
topology: v6e:2x2x1
jax: 0.10.0
libtpu: 0.0.40
codegen_flags: <defaults>
</compile_context>

<pallas_src>
import jax
import jax.numpy as jnp
from jax.experimental import pallas as pl
from jax.experimental.pallas import tpu as pltpu


def _cdiv(a, b):
    return (a + b - 1) // b


def _round_up(n, m):
    return _cdiv(n, m) * m


def mlp_kernel(x_ref, w1_ref, b1_ref, w23t_ref, b23_ref, o_ref):
    cdt = x_ref.dtype
    x = x_ref[...]                                                    # (TB, D)

    # fc1 (+ eval-mode dropout == identity); fp32 accumulation on the MXU.
    h1 = (jnp.dot(x, w1_ref[...], preferred_element_type=jnp.float32)
          + b1_ref[...]).astype(cdt)                                  # (TB, 64)

    # fc2 -> dropout(identity) -> fc3 folded into a single (64,1) column,
    # computed transposed so the result is a lane-dense (1, TB) row:
    #   (1, 64) . (TB, 64)^T  ->  (1, TB)
    logits = jax.lax.dot_general(
        w23t_ref[...], h1,
        dimension_numbers=(((1,), (1,)), ((), ())),
        preferred_element_type=jnp.float32) + b23_ref[0, 0]           # (1, TB)

    o_ref[...] = jax.nn.sigmoid(logits).astype(o_ref.dtype)


def mlp_forward(x, params, *, tile_b=4096):
    """x: (B, D) -> (B,) float32   (matches output.squeeze(1) of the PyTorch MLP).

    Compute dtype follows x.dtype (pass bf16 x only if it is already bf16 in HBM;
    casting it here would just add an extra HBM pass for no MXU benefit)."""
    w1, b1, w2, b2, w3, b3 = params
    B, D = x.shape
    cdt = x.dtype
    itemsize = jnp.dtype(cdt).itemsize

    # One-time parameter prep (tiny arrays; stay VMEM-resident across the grid).
    w1c = w1.astype(cdt)                                   # (D, 64)
    b1f = b1.reshape(1, 64).astype(jnp.float32)            # (1, 64)
    w23t = (w2 @ w3).T.astype(cdt)                         # (1, 64)  folded fc2·fc3
    b23 = (b2 @ w3 + b3).reshape(1, 1).astype(jnp.float32)  # scalar -> SMEM

    # --- VMEM-aware batch tile -------------------------------------------------
    # Per-step working set: double-buffered (tb, D) x block + (tb, 64) fp32 fc1
    # temp + double-buffered (1, tb) fp32 output row, plus the resident weights.
    per_row = 2 * D * itemsize + 64 * 4 + 2 * 4
    weight_bytes = (D * 64 + 64) * itemsize + 64 * 4 + 4
    budget = 40 * 1024 * 1024          # safe under v7x's 64 MiB physical VMEM
    tb_cap = max(128, ((budget - weight_bytes) // per_row) // 128 * 128)

    tb = max(128, (min(int(tile_b), tb_cap) // 128) * 128)
    if B >= 256:
        # Keep >= 2 grid steps so the parallel batch axis can shard across the
        # two v7x TensorCores (also fine on single-TC v5e/v6e).
        tb = min(tb, _round_up(_cdiv(B, 2), 128))
    if tb >= B:
        tb = B                         # single full-array block (always layout-legal)
    grid = (_cdiv(B, tb),)             # ragged tail: clipped reads + masked writes

    working = weight_bytes + tb * per_row
    vmem_limit = int(min(48 * 1024 * 1024,
                         max(32 * 1024 * 1024, working * 3 // 2)))

    cost = pl.CostEstimate(
        flops=2 * B * (D * 64 + 64),
        transcendentals=B,                                 # sigmoid -> one exp per row
        bytes_accessed=B * D * itemsize + B * 4 + weight_bytes,
    )

    out = pl.pallas_call(
        mlp_kernel,
        out_shape=jax.ShapeDtypeStruct((1, B), jnp.float32),
        grid=grid,
        in_specs=[
            pl.BlockSpec((tb, D), lambda i: (i, 0)),       # x tile (streamed over batch)
            pl.BlockSpec((D, 64), lambda i: (0, 0)),       # w1 (VMEM-resident)
            pl.BlockSpec((1, 64), lambda i: (0, 0)),       # b1
            pl.BlockSpec((1, 64), lambda i: (0, 0)),       # folded (fc2·fc3)^T
            pl.BlockSpec(memory_space=pltpu.MemorySpace.SMEM),  # folded bias scalar
        ],
        out_specs=pl.BlockSpec((1, tb), lambda i: (0, i)), # lane-dense row output
        compiler_params=pltpu.CompilerParams(
            dimension_semantics=("parallel",),
            vmem_limit_bytes=vmem_limit),
        cost_estimate=cost,
    )(x, w1c, b1f, w23t, b23)

    return out[0]                                          # squeeze(1)


def init_params(key, input_size):
    """PyTorch-style init: U(-1/sqrt(fan_in), +1/sqrt(fan_in)); weights stored (in, out)."""
    ks = jax.random.split(key, 6)

    def lin(kw, kb, fan_in, fan_out):
        bound = 1.0 / jnp.sqrt(fan_in)
        w = jax.random.uniform(kw, (fan_in, fan_out), jnp.float32, -bound, bound)
        b = jax.random.uniform(kb, (1, fan_out), jnp.float32, -bound, bound)
        return w, b

    w1, b1 = lin(ks[0], ks[1], input_size, 64)
    w2, b2 = lin(ks[2], ks[3], 64, 32)
    w3, b3 = lin(ks[4], ks[5], 32, 1)
    return (w1, b1, w2, b2, w3, b3)


def _ref_forward(x, params):
    """Pure-JAX reference of the unfolded module (eval-mode dropout == identity)."""
    w1, b1, w2, b2, w3, b3 = params
    xf = x.astype(jnp.float32)
    return jax.nn.sigmoid(((xf @ w1 + b1) @ w2 + b2) @ w3 + b3)[:, 0]


if __name__ == "__main__":
    key = jax.random.PRNGKey(0)
    k_x, k_p, k_x2 = jax.random.split(key, 3)

    B, INPUT_SIZE = 8, 32
    x = jax.random.normal(k_x, (B, INPUT_SIZE), jnp.float32)
    params = init_params(k_p, INPUT_SIZE)

    # fp32 path, tiny batch (single full-array block, one grid step).
    out = mlp_forward(x, params)
    jax.block_until_ready(out)
    ref = _ref_forward(x, params)
    assert out.shape == (B,)
    assert jnp.allclose(out, ref, atol=1e-5, rtol=1e-5)

    # bf16 path (caller already holds bf16 x -> halves x HBM bytes); fp32 accum.
    out_bf16 = mlp_forward(x.astype(jnp.bfloat16), params)
    jax.block_until_ready(out_bf16)
    assert jnp.allclose(out_bf16, ref, atol=5e-2)

    # Larger ragged batch: multi-step grid (>=2 steps for megacore sharding),
    # no jnp.pad — tail block handled by clipped reads / masked writes.
    B2 = 1150
    x2 = jax.random.normal(k_x2, (B2, INPUT_SIZE), jnp.float32)
    out2 = mlp_forward(x2, params)
    jax.block_until_ready(out2)
    ref2 = _ref_forward(x2, params)
    assert out2.shape == (B2,)
    assert jnp.allclose(out2, ref2, atol=1e-5, rtol=1e-5)

    print("KERNEL_OK")
</pallas_src>

<mosaic_0001>
module attributes {stable_mosaic.version = 11 : i64} {
  func.func @mlp_kernel(%arg0: i32, %arg1: memref<8x32xf32, #tpu.memory_space<vmem>>, %arg2: memref<32x64xf32, #tpu.memory_space<vmem>>, %arg3: memref<1x64xf32, #tpu.memory_space<vmem>>, %arg4: memref<1x64xf32, #tpu.memory_space<vmem>>, %arg5: memref<1x1xf32, #tpu.memory_space<smem>>, %arg6: memref<1x8xf32, #tpu.memory_space<vmem>>) attributes {dimension_semantics = [#tpu.dimension_semantics<parallel>], iteration_bounds = array<i64: 1>, scalar_prefetch = 0 : i64, scratch_operands = 0 : i64, tpu.core_type = #tpu.core_type<tc>, window_params = [{transform_indices = @transform_0, window_bounds = array<i64: 8, 32>}, {pipeline_mode = #tpu.pipeline_mode<synchronous>, transform_indices = @transform_1, window_bounds = array<i64: 32, 64>}, {pipeline_mode = #tpu.pipeline_mode<synchronous>, transform_indices = @transform_2, window_bounds = array<i64: 1, 64>}, {pipeline_mode = #tpu.pipeline_mode<synchronous>, transform_indices = @transform_3, window_bounds = array<i64: 1, 64>}, {transform_indices = @transform_4, window_bounds = array<i64: 1, 1>}, {transform_indices = @transform_5, window_bounds = array<i64: 1, 8>}]} {
    %c0 = arith.constant 0 : index
    %c0_0 = arith.constant 0 : index
    %0 = vector.load %arg1[%c0, %c0_0] : memref<8x32xf32, #tpu.memory_space<vmem>>, vector<8x32xf32>
    %c0_1 = arith.constant 0 : index
    %c0_2 = arith.constant 0 : index
    %1 = vector.load %arg2[%c0_1, %c0_2] : memref<32x64xf32, #tpu.memory_space<vmem>>, vector<32x64xf32>
    %cst = arith.constant dense<0.000000e+00> : vector<8x64xf32>
    %2 = tpu.matmul %0, %1, %cst {dimension_numbers = #tpu.dot_dimension_numbers<[1], [0], [0], [1], [0, 0, 1, 1], [], []>} : vector<8x32xf32>, vector<32x64xf32>, vector<8x64xf32> -> vector<8x64xf32>
    %c0_3 = arith.constant 0 : index
    %c0_4 = arith.constant 0 : index
    %3 = vector.load %arg3[%c0_3, %c0_4] : memref<1x64xf32, #tpu.memory_space<vmem>>, vector<1x64xf32>
    %4 = vector.broadcast %3 : vector<1x64xf32> to vector<8x64xf32>
    %5 = arith.addf %2, %4 : vector<8x64xf32>
    %c0_5 = arith.constant 0 : index
    %c0_6 = arith.constant 0 : index
    %6 = vector.load %arg4[%c0_5, %c0_6] : memref<1x64xf32, #tpu.memory_space<vmem>>, vector<1x64xf32>
    %cst_7 = arith.constant dense<0.000000e+00> : vector<1x8xf32>
    %7 = tpu.matmul %6, %5, %cst_7 {dimension_numbers = #tpu.dot_dimension_numbers<[1], [1], [0], [0], [0, 0, 1, 0], [], []>} : vector<1x64xf32>, vector<8x64xf32>, vector<1x8xf32> -> vector<1x8xf32>
    %c0_8 = arith.constant 0 : index
    %c0_9 = arith.constant 0 : index
    %8 = memref.load %arg5[%c0_8, %c0_9] : memref<1x1xf32, #tpu.memory_space<smem>>
    %9 = vector.broadcast %8 : f32 to vector<1x8xf32>
    %10 = arith.addf %7, %9 : vector<1x8xf32>
    %11 = arith.negf %10 : vector<1x8xf32>
    %12 = math.exp %11 : vector<1x8xf32>
    %cst_10 = arith.constant 1.000000e+00 : f32
    %13 = vector.broadcast %cst_10 : f32 to vector<1x8xf32>
    %14 = arith.addf %13, %12 : vector<1x8xf32>
    %15 = arith.divf %13, %14 : vector<1x8xf32>
    %c0_11 = arith.constant 0 : index
    %c0_12 = arith.constant 0 : index
    %16 = vector.load %arg6[%c0_11, %c0_12] : memref<1x8xf32, #tpu.memory_space<vmem>>, vector<1x8xf32>
    tpu.vector_store %arg6[%c0_11, %c0_12], %15 {strides = array<i32>} : memref<1x8xf32, #tpu.memory_space<vmem>>, vector<1x8xf32>,
    return
  }
  func.func @transform_0(%arg0: i32) -> (i32, i32) {
    %c0_i32 = arith.constant 0 : i32
    %c0_i32_0 = arith.constant 0 : i32
    return %arg0, %c0_i32 : i32, i32
  }
  func.func @transform_1(%arg0: i32) -> (i32, i32) {
    %c0_i32 = arith.constant 0 : i32
    %c0_i32_0 = arith.constant 0 : i32
    %c0_i32_1 = arith.constant 0 : i32
    return %c0_i32, %c0_i32_0 : i32, i32
  }
  func.func @transform_2(%arg0: i32) -> (i32, i32) {
    %c0_i32 = arith.constant 0 : i32
    %c0_i32_0 = arith.constant 0 : i32
    %c0_i32_1 = arith.constant 0 : i32
    return %c0_i32, %c0_i32_0 : i32, i32
  }
  func.func @transform_3(%arg0: i32) -> (i32, i32) {
    %c0_i32 = arith.constant 0 : i32
    %c0_i32_0 = arith.constant 0 : i32
    %c0_i32_1 = arith.constant 0 : i32
    return %c0_i32, %c0_i32_0 : i32, i32
  }
  func.func @transform_4(%arg0: i32) -> (i32, i32) {
    %c0_i32 = arith.constant 0 : i32
    %c0_i32_0 = arith.constant 0 : i32
    %c0_i32_1 = arith.constant 0 : i32
    return %c0_i32, %c0_i32_0 : i32, i32
  }
  func.func @transform_5(%arg0: i32) -> (i32, i32) {
    %c0_i32 = arith.constant 0 : i32
    %c0_i32_0 = arith.constant 0 : i32
    return %c0_i32, %arg0 : i32, i32
  }
}

</mosaic_0001>

<bundles_post_ra>
// kernel: tpu_custom_call.1
= control target key start
LH: loop header
LB: loop body
LE: loop exit
PB: predicated region body
PF: predicated region fallthrough
CT: control target
= control target key end

     0   :  { %11 = vsyncpa [#allocation4], 0  ;;  %s398_s0 = inlined_call_operand.hbm [shape: f32[8,32], index: 0, kind: input, shape index: {}]   ;;  %s399_s1 = inlined_call_operand.hbm [shape: f32[32,64], index: 1, kind: input, shape index: {}]   ;;  %s400_s2 = inlined_call_operand.vmem [shape: f32[1,64], index: 2, kind: input, shape index: {}]   ;;  %s401_s3 = inlined_call_operand.vmem [shape: f32[1,64], index: 3, kind: input, shape index: {}]   ;;  %s402_s4 = inlined_call_operand.<no memory space> [shape: f32[1,1], index: 4, kind: input, shape index: {}]   ;;  %s403_s5 = inlined_call_operand.hbm [shape: f32[1,8], index: 5, kind: output, shape index: {}]  }
   0x1   :  { %12 = vsyncpa [#allocation7], 0 }
   0x2   :  { %13 = vsyncpa [#allocation5], 0  ;;  %s343_s18 = smov [#allocation3]   ;;  %s344_s20 = smov [#allocation6]  }
   0x3   :  { %s20_s19 = sshll.u32 %s343_s18, 4  ;;  %s29_s21 = sshll.u32 %s344_s20, 4  ;;  %s21_s19 = int_to_ptr.vmem [resolvable:$true] %s20_s19  ;;  %s30_s21 = int_to_ptr.vmem [resolvable:$true] %s29_s21 }
   0x4   :  { %s285_s22 = scalar_lea.vmem %s21_s19, 128  ;;  %p290_p1 = scmp.lt.s32.totalorder %s21_s19, %s21_s19 }
   0x5   :  { %p286_p0 = scmp.ne.s32.totalorder %s21_s19, %s285_s22  ;;  %p291_p2 = scmp.lt.s32.totalorder %s285_s22, %s285_s22 }
   0x7   :  { %p292_p3 = por %p291_p2, %p290_p1 }
   0x9   :  { %p293_p4 = pnand %p292_p3, %p286_p0 }
   0xb   :  { %296 = shalt.err (!%p293_p4)
}
   0xc   :  { %23 = dma.hbm_to_vmem [thread:$0]  %s398_s0, 128, %s21_s19, [#allocation4]  }
   0xd   :  { %s305_s25 = scalar_lea.vmem %s30_s21, 512  ;;  %p310_p6 = scmp.lt.s32.totalorder %s30_s21, %s30_s21 }
   0xe   :  { %p306_p5 = scmp.ne.s32.totalorder %s30_s21, %s305_s25  ;;  %p311_p7 = scmp.lt.s32.totalorder %s305_s25, %s305_s25 }
  0x10   :  { %p312_p8 = por %p311_p7, %p310_p6 }
  0x12   :  { %p313_p9 = pnand %p312_p8, %p306_p5 }
  0x14   :  { %316 = shalt.err (!%p313_p9)
}
  0x15   :  { %s345_s26 = smov 128   ;;  %s346_s27 = smov 8  }
  0x16   :  { %35 = dma.hbm_to_vmem [thread:$0]  %s399_s1, 512, %s30_s21, [#allocation7], %s345_s26, %s345_s26, %s346_s27  }
  0x17   :  { %337 = dma.done.wait [#allocation4], 128  }
  0x18   :  { %338 = vsyncadd [#allocation4], 4294967168 }
  0x19   :  { %339 = dma.done.wait [#allocation7], 512  }
  0x1a   :  { %340 = vsyncadd [#allocation7], 4294966784  ;;  %v347_v0 = vmov 0.0   ;;  %vm348_vm0 = vmmov 0   ;;  %v52_v1 = vld [vmem:[#allocation6 + $0x18] sm:$0xff]  ;;  %v51_v2 = vld [vmem:[#allocation6 + $0x10] sm:$0xff]  ;;  %v136_v11 = vstv %s402_s4 }
  0x1b   :  { %250 = vmatprep.subr.mxu0 %v347_v0  ;;  %258 = vmatprep.mubr.msk.f32.mxu0 %vm348_vm0, %v347_v0  ;;  %v50_v3 = vld [vmem:[#allocation6 + $0x8] sm:$0xff]  ;;  %v49_v4 = vld [vmem:[#allocation6] sm:$0xff]  ;;  %v48_v5 = vld [vmem:[#allocation3] sm:$0xff]  ;;  %vm60_vm1 = vcmask 261120   ;;  %vm137_vm2 = vcmask 523264   ;;  %vm220_vm3 = vcmask 57344  }
  0x1c   :  { %261 = vmatprep.subr.mxu1 %v347_v0  ;;  %263 = vmatprep.mubr.msk.f32.mxu1 %vm348_vm0, %v347_v0  ;;  %v238_v6 = vld [vmem:[%s400_s2] ss:$0 sm:$0xff]  ;;  %s349_s2 = smov [#allocation8]  }
  0x1d   :  { %251 = vmatpush3.msra.mxu0 %v52_v1  ;;  %v134_v10 = vld [vmem:[%s401_s3] sm:$0x1]  ;;  %s228_s9 = sshll.u32 %s349_s2, 4  ;;  %s229_s9 = int_to_ptr.vmem [resolvable:$true] %s228_s9 }
  0x1e   :  { %252 = vmatprep.subr.mxu0 %v347_v0  ;;  %s317_s3 = scalar_lea.vmem %s229_s9, 16  ;;  %s321_s10 = scalar_lea.vmem %s229_s9, 32 }
  0x1f   :  { %253 = vmatpush3.msra.mxu0 %v51_v2  ;;  %p318_p10 = scmp.ne.s32.totalorder %s229_s9, %s317_s3  ;;  %p322_p11 = scmp.lt.s32.totalorder %s229_s9, %s229_s9 }
  0x20   :  { %254 = vmatprep.subr.mxu0 %v347_v0  ;;  %p323_p12 = scmp.lt.s32.totalorder %s321_s10, %s317_s3 }
  0x21   :  { %255 = vmatpush3.msra.mxu0 %v50_v3 }
  0x22   :  { %256 = vmatprep.subr.mxu0 %v347_v0  ;;  %p324_p13 = por %p323_p12, %p322_p11 }
  0x23   :  { %257 = vmatpush3.msra.mxu0 %v49_v4 }
  0x24   :  { %259 = vmatmul.mubr.msk.f32.vlgmr.msra.gmra.mxu0 %vm60_vm1, %v48_v5  ;;  %p325_p0 = pnand %p324_p13, %p318_p10 }
  0xe4   :  { %v130_v7 = vpop.f32.mrf.mxu0 }
  0xe5   :  { %v131_v8 = vadd.f32 %v238_v6, %v130_v7 }
  0xe6   :  { %v260_v9 = vpop.f32.mrf.mxu0 }
  0xe7   :  { %262 = vmatpush3.xpose.msk.msra.mxu1 %vm137_vm2, %v131_v8 }
  0xea   :  { %264 = vmatmul.mubr.msk.f32.vlgmr.msra.gmra.mxu1 %vm137_vm2, %v134_v10 }
 0x1aa   :  { %v210_v12 = vpop.f32.mrf.mxu1 }
 0x1ab   :  { %v211_v13 = vadd.f32 %v210_v12, %v136_v11 }
 0x1ac   :  { %v265_v14 = vpop.f32.mrf.mxu1 }
 0x1ad   :  { %v242_v15 = vmul.f32 -1.442695, %v211_v13 }
 0x1af   :  { %273 = vpow2.f32 %v242_v15 }
 0x1bc   :  { %v274_v16 = vpop.eup %273 }
 0x1bd   :  { %v217_v17 = vadd.f32 1.0, %v274_v16 }
 0x1bf   :  { %275 = vrcp.f32 %v217_v17 }
 0x1cc   :  { %v276_v18 = vpop.eup %275 }
 0x1cd   :  { %221 = vst.msk [vmem:[#allocation8] sm:$0x1] %vm220_vm3, %v276_v18 }
 0x1ce   :  { %328 = shalt.err (!%p325_p0)
}
 0x1cf   :  { %231 = dma.vmem_to_hbm [thread:$0]  %s229_s9, 16, %s403_s5, [#allocation5]  }
 0x1d0   :  { %341 = dma.done.wait [#allocation5], 16  }
 0x1d1   :  { %342 = vsyncadd [#allocation5], 4294967280 }
 0x1d2   :  { %235 = vsyncpa [#allocation4], 1 }
 0x1d3   :  { %236 = vsyncpa [#allocation7], 1 }
 0x1d4   :  { %237 = vsyncpa [#allocation5], 1 }

</bundles_post_ra>
